<compile_context>
chip_gen: v5e
topology: v5e:2x2
jax: 0.10.0
libtpu: 0.0.40
codegen_flags: <defaults>
</compile_context>

<pallas_src>
import jax
import jax.numpy as jnp
from jax.experimental import pallas as pl
from jax.experimental.pallas import tpu as pltpu

LANE = 128
_MIB = 1024 * 1024


def _round_up(x: int, m: int) -> int:
    return ((x + m - 1) // m) * m


def _vmem_capacity_bytes() -> int:
    try:
        cap = int(pltpu.get_tpu_info().vmem_capacity_bytes)
        if cap > 0:
            return cap
    except Exception:
        pass
    return 64 * _MIB  # conservative fallback: v7x per-TensorCore VMEM


# --------------------------------------------------------------------------
# Kernels
# --------------------------------------------------------------------------

def _mlp_kernel_resident(x_ref, w1_ref, b1_ref, w2_ref, b2_ref, o_ref):
    # Full weights resident in VMEM; one batch tile per grid step.
    h = jnp.dot(x_ref[...], w1_ref[...], preferred_element_type=jnp.float32)
    h = jnp.maximum(h + b1_ref[...], 0.0)
    out = jnp.dot(h.astype(w2_ref.dtype), w2_ref[...],
                  preferred_element_type=jnp.float32)
    o_ref[...] = (out + b2_ref[...]).astype(o_ref.dtype)


def _mlp_kernel_hidden_tiled(x_ref, w1_ref, b1_ref, w2_ref, b2_ref, o_ref,
                             acc_ref):
    # Hidden dim split across the last ("arbitrary") grid axis.  ReLU is
    # elementwise over hidden, so each hidden chunk's activation is exact;
    # the second matmul partial sums accumulate into an f32 scratch.
    k = pl.program_id(1)

    @pl.when(k == 0)
    def _():
        acc_ref[...] = jnp.zeros_like(acc_ref)

    ph = jnp.dot(x_ref[...], w1_ref[...], preferred_element_type=jnp.float32)
    ph = jnp.maximum(ph + b1_ref[...], 0.0)
    acc_ref[...] += jnp.dot(ph.astype(w2_ref.dtype), w2_ref[...],
                            preferred_element_type=jnp.float32)

    @pl.when(k == pl.num_programs(1) - 1)
    def _():
        o_ref[...] = (acc_ref[...] + b2_ref[...]).astype(o_ref.dtype)


# --------------------------------------------------------------------------
# Parameter preparation (run ONCE, outside the hot path)
# --------------------------------------------------------------------------

def prepare_mlp_params(w1, b1, w2, b2, *, compute_dtype=jnp.bfloat16):
    """Pad weights to lane-dense (multiple-of-128) feature dims and cast to
    the compute dtype once, so the per-call forward only pads x."""
    input_dim, hidden_dim = w1.shape
    output_dim = w2.shape[1]
    compute_dtype = jnp.dtype(compute_dtype)

    in_p = _round_up(input_dim, LANE)
    hid_p = _round_up(hidden_dim, LANE)
    out_p = _round_up(output_dim, LANE)

    # Zero-padding is exact for Linear -> ReLU -> Linear.
    w1p = jnp.pad(w1, ((0, in_p - input_dim),
                       (0, hid_p - hidden_dim))).astype(compute_dtype)
    w2p = jnp.pad(w2, ((0, hid_p - hidden_dim),
                       (0, out_p - output_dim))).astype(compute_dtype)
    b1p = jnp.pad(jnp.asarray(b1, jnp.float32).reshape(1, -1),
                  ((0, 0), (0, hid_p - hidden_dim)))
    b2p = jnp.pad(jnp.asarray(b2, jnp.float32).reshape(1, -1),
                  ((0, 0), (0, out_p - output_dim)))

    return {"w1": w1p, "b1": b1p, "w2": w2p, "b2": b2p,
            "dims": (input_dim, hidden_dim, output_dim),
            "compute_dtype": compute_dtype}


# --------------------------------------------------------------------------
# Forward
# --------------------------------------------------------------------------

def mlp_forward(x, params, *, batch_tile=None, force_hidden_tile=None):
    """Fused  out = relu(x @ w1 + b1) @ w2 + b2  on TPU.

    x: [B, input_dim]; params from prepare_mlp_params().
    """
    input_dim, hidden_dim, output_dim = params["dims"]
    w1p, b1p, w2p, b2p = params["w1"], params["b1"], params["w2"], params["b2"]
    compute_dtype = params["compute_dtype"]
    in_p, hid_p = w1p.shape
    out_p = w2p.shape[1]

    B = x.shape[0]
    assert x.shape[1] == input_dim
    out_dtype = x.dtype
    cd = compute_dtype.itemsize
    od = jnp.dtype(out_dtype).itemsize
    min_sub = 16 if cd < 4 else 8   # packed dtypes need 16-row sublane tiles

    vmem_cap = _vmem_capacity_bytes()
    budget = int(0.80 * vmem_cap)   # headroom for compiler-internal scratch

    # ---- batch tile --------------------------------------------------------
    if batch_tile is None:
        if B <= 64:
            # Tiny batch: one full-extent tile; don't pad rows up to 128.
            batch_tile = _round_up(B, min_sub)
        else:
            cap = 1024 if (hid_p <= 512 and out_p <= 512) else 512
            batch_tile = min(cap, _round_up(B, LANE))
            # Cap the f32 intermediate (batch_tile x hid_p): matters on v7x.
            interm_cap = min(12 * _MIB, max(2 * _MIB, budget // 4))
            max_bt = max(LANE, (interm_cap // (hid_p * 4)) // min_sub * min_sub)
            batch_tile = min(batch_tile, max_bt)
    batch_tile = max(min_sub, _round_up(int(batch_tile), min_sub))
    B_p = _round_up(B, batch_tile)
    # Keep >= 2 grid steps when feasible so the "parallel" batch axis can be
    # sharded across v7x's two TensorCores.
    if B_p // batch_tile == 1 and batch_tile >= 2 * LANE:
        batch_tile //= 2
        B_p = _round_up(B, batch_tile)
    n_bt = B_p // batch_tile

    # ---- VMEM estimates ----------------------------------------------------
    x_tiles = 2 * batch_tile * in_p * cd          # double-buffered x tiles
    o_tiles = 2 * batch_tile * out_p * od         # double-buffered out tiles
    out_acc_bytes = batch_tile * out_p * 4        # f32 result / accumulator

    def _resident_bytes(weight_bufs):
        w = weight_bufs * ((in_p * hid_p + hid_p * out_p) * cd
                           + (hid_p + out_p) * 4)
        return w + x_tiles + o_tiles + batch_tile * hid_p * 4 + out_acc_bytes

    def _tiled_bytes(ht):
        w = 2 * ((in_p * ht + ht * out_p) * cd + ht * 4) + 2 * out_p * 4
        return w + x_tiles + o_tiles + batch_tile * ht * 4 + out_acc_bytes

    # ---- pad x (the only per-call pad) -------------------------------------
    if B_p != B or in_p != input_dim:
        x = jnp.pad(x, ((0, B_p - B), (0, in_p - input_dim)))
    xp = x.astype(compute_dtype)

    def _call(single_buffer_weights):
        wbufs = 1 if single_buffer_weights else 2
        const_mode = pl.Buffered(1) if single_buffer_weights else None

        def _const_spec(shape, index_map):
            if const_mode is None:
                return pl.BlockSpec(shape, index_map)
            return pl.BlockSpec(shape, index_map, pipeline_mode=const_mode)

        use_resident = (force_hidden_tile is None
                        and _resident_bytes(wbufs) <= budget)

        if use_resident:
            est = _resident_bytes(wbufs)
            grid = (n_bt,)
            kernel = _mlp_kernel_resident
            in_specs = [
                pl.BlockSpec((batch_tile, in_p), lambda i: (i, 0)),
                _const_spec((in_p, hid_p), lambda i: (0, 0)),
                _const_spec((1, hid_p), lambda i: (0, 0)),
                _const_spec((hid_p, out_p), lambda i: (0, 0)),
                _const_spec((1, out_p), lambda i: (0, 0)),
            ]
            out_specs = pl.BlockSpec((batch_tile, out_p), lambda i: (i, 0))
            scratch_shapes = []
            dim_sem = ("parallel",)
        else:
            if force_hidden_tile is not None:
                hid_tile = int(force_hidden_tile)
                assert hid_tile % LANE == 0 and hid_p % hid_tile == 0
            else:
                n128 = hid_p // LANE
                cands = sorted((d * LANE for d in range(1, n128 + 1)
                                if n128 % d == 0), reverse=True)
                hid_tile = cands[-1]          # worst case: 128
                for t in cands:
                    if _tiled_bytes(t) <= budget:
                        hid_tile = t
                        break
            est = _tiled_bytes(hid_tile)
            grid = (n_bt, hid_p // hid_tile)  # reduction axis last
            kernel = _mlp_kernel_hidden_tiled
            in_specs = [
                pl.BlockSpec((batch_tile, in_p), lambda i, k: (i, 0)),
                pl.BlockSpec((in_p, hid_tile), lambda i, k: (0, k)),
                pl.BlockSpec((1, hid_tile), lambda i, k: (0, k)),
                pl.BlockSpec((hid_tile, out_p), lambda i, k: (k, 0)),
                _const_spec((1, out_p), lambda i, k: (0, 0)),
            ]
            out_specs = pl.BlockSpec((batch_tile, out_p), lambda i, k: (i, 0))
            scratch_shapes = [pltpu.VMEM((batch_tile, out_p), jnp.float32)]
            dim_sem = ("parallel", "arbitrary")

        vmem_limit = int(min(0.90 * vmem_cap, max(32 * _MIB, 1.3 * est)))

        cost = pl.CostEstimate(
            flops=2 * B_p * (in_p * hid_p + hid_p * out_p),
            transcendentals=0,
            bytes_accessed=(B_p * in_p * cd + w1p.size * cd + w2p.size * cd
                            + b1p.size * 4 + b2p.size * 4 + B_p * out_p * od))

        return pl.pallas_call(
            kernel,
            out_shape=jax.ShapeDtypeStruct((B_p, out_p), out_dtype),
            grid_spec=pltpu.PrefetchScalarGridSpec(
                num_scalar_prefetch=0,
                grid=grid,
                in_specs=in_specs,
                out_specs=out_specs,
                scratch_shapes=scratch_shapes),
            compiler_params=pltpu.CompilerParams(
                dimension_semantics=dim_sem,
                vmem_limit_bytes=vmem_limit),
            cost_estimate=cost,
        )(xp, w1p, b1p, w2p, b2p)

    try:
        out_padded = _call(single_buffer_weights=True)
    except Exception:
        # TODO(synk): pipeline_mode=pl.Buffered(1) not supported on this jax
        # build -- retry with default (double-buffered) constant-index weights.
        out_padded = _call(single_buffer_weights=False)

    if B_p != B or out_p != output_dim:
        return out_padded[:B, :output_dim]
    return out_padded


# --------------------------------------------------------------------------

if __name__ == "__main__":
    # Small shapes consistent with MLP(input_dim, hidden_dim, output_dim).
    B, input_dim, hidden_dim, output_dim = 24, 48, 256, 40

    key = jax.random.PRNGKey(0)
    kx, kw1, kb1, kw2, kb2 = jax.random.split(key, 5)

    x = jax.random.normal(kx, (B, input_dim), dtype=jnp.float32)
    lim1 = 1.0 / (input_dim ** 0.5)
    lim2 = 1.0 / (hidden_dim ** 0.5)
    w1 = jax.random.uniform(kw1, (input_dim, hidden_dim), jnp.float32, -lim1, lim1)
    b1 = jax.random.uniform(kb1, (hidden_dim,), jnp.float32, -lim1, lim1)
    w2 = jax.random.uniform(kw2, (hidden_dim, output_dim), jnp.float32, -lim2, lim2)
    b2 = jax.random.uniform(kb2, (output_dim,), jnp.float32, -lim2, lim2)

    # Pure-JAX high-precision reference of the implied forward pass.
    ref = jnp.maximum(
        jnp.dot(x, w1, precision=jax.lax.Precision.HIGHEST) + b1, 0.0)
    ref = jnp.dot(ref, w2, precision=jax.lax.Precision.HIGHEST) + b2

    # Explicit f32 compute path (resident-weight fast path).
    params_f32 = prepare_mlp_params(w1, b1, w2, b2, compute_dtype=jnp.float32)
    out_f32 = jax.block_until_ready(mlp_forward(x, params_f32))
    assert out_f32.shape == (B, output_dim)
    assert jnp.allclose(out_f32, ref, atol=1e-3, rtol=1e-3)

    # Default bf16 compute (f32 accumulation) -- params prepared ONCE, reused.
    params = prepare_mlp_params(w1, b1, w2, b2)
    out_bf16 = jax.block_until_ready(mlp_forward(x, params))
    assert out_bf16.shape == (B, output_dim)
    assert jnp.allclose(out_bf16.astype(jnp.float32), ref, atol=5e-2, rtol=5e-2)

    # Exercise the hidden-dim-tiled (reduction) fallback that kicks in when
    # resident weights would not fit VMEM (forced here at small shapes).
    out_tiled = jax.block_until_ready(
        mlp_forward(x, params, force_hidden_tile=128))
    assert out_tiled.shape == (B, output_dim)
    assert jnp.allclose(out_tiled.astype(jnp.float32), ref, atol=5e-2, rtol=5e-2)

    print("KERNEL_OK")
</pallas_src>

<mosaic_0001>
module attributes {stable_mosaic.version = 11 : i64} {
  func.func @_mlp_kernel_resident(%arg0: i32, %arg1: memref<24x128xf32, #tpu.memory_space<vmem>>, %arg2: memref<128x256xf32, #tpu.memory_space<vmem>>, %arg3: memref<1x256xf32, #tpu.memory_space<vmem>>, %arg4: memref<256x128xf32, #tpu.memory_space<vmem>>, %arg5: memref<1x128xf32, #tpu.memory_space<vmem>>, %arg6: memref<24x128xf32, #tpu.memory_space<vmem>>) attributes {dimension_semantics = [#tpu.dimension_semantics<parallel>], iteration_bounds = array<i64: 1>, scalar_prefetch = 0 : i64, scratch_operands = 0 : i64, tpu.core_type = #tpu.core_type<tc>, window_params = [{transform_indices = @transform_0, window_bounds = array<i64: 24, 128>}, {pipeline_mode = #tpu.pipeline_mode<synchronous>, transform_indices = @transform_1, window_bounds = array<i64: 128, 256>}, {pipeline_mode = #tpu.pipeline_mode<synchronous>, transform_indices = @transform_2, window_bounds = array<i64: 1, 256>}, {pipeline_mode = #tpu.pipeline_mode<synchronous>, transform_indices = @transform_3, window_bounds = array<i64: 256, 128>}, {pipeline_mode = #tpu.pipeline_mode<synchronous>, transform_indices = @transform_4, window_bounds = array<i64: 1, 128>}, {transform_indices = @transform_5, window_bounds = array<i64: 24, 128>}]} {
    %c0 = arith.constant 0 : index
    %c0_0 = arith.constant 0 : index
    %0 = vector.load %arg1[%c0, %c0_0] : memref<24x128xf32, #tpu.memory_space<vmem>>, vector<24x128xf32>
    %c0_1 = arith.constant 0 : index
    %c0_2 = arith.constant 0 : index
    %1 = vector.load %arg2[%c0_1, %c0_2] : memref<128x256xf32, #tpu.memory_space<vmem>>, vector<128x256xf32>
    %cst = arith.constant dense<0.000000e+00> : vector<24x256xf32>
    %2 = tpu.matmul %0, %1, %cst {dimension_numbers = #tpu.dot_dimension_numbers<[1], [0], [0], [1], [0, 0, 1, 1], [], []>} : vector<24x128xf32>, vector<128x256xf32>, vector<24x256xf32> -> vector<24x256xf32>
    %c0_3 = arith.constant 0 : index
    %c0_4 = arith.constant 0 : index
    %3 = vector.load %arg3[%c0_3, %c0_4] : memref<1x256xf32, #tpu.memory_space<vmem>>, vector<1x256xf32>
    %4 = vector.broadcast %3 : vector<1x256xf32> to vector<24x256xf32>
    %5 = arith.addf %2, %4 : vector<24x256xf32>
    %cst_5 = arith.constant 0.000000e+00 : f32
    %6 = vector.broadcast %cst_5 : f32 to vector<24x256xf32>
    %7 = arith.maximumf %5, %6 : vector<24x256xf32>
    %c0_6 = arith.constant 0 : index
    %c0_7 = arith.constant 0 : index
    %8 = vector.load %arg4[%c0_6, %c0_7] : memref<256x128xf32, #tpu.memory_space<vmem>>, vector<256x128xf32>
    %cst_8 = arith.constant dense<0.000000e+00> : vector<24x128xf32>
    %9 = tpu.matmul %7, %8, %cst_8 {dimension_numbers = #tpu.dot_dimension_numbers<[1], [0], [0], [1], [0, 0, 1, 1], [], []>} : vector<24x256xf32>, vector<256x128xf32>, vector<24x128xf32> -> vector<24x128xf32>
    %c0_9 = arith.constant 0 : index
    %c0_10 = arith.constant 0 : index
    %10 = vector.load %arg5[%c0_9, %c0_10] : memref<1x128xf32, #tpu.memory_space<vmem>>, vector<1x128xf32>
    %11 = vector.broadcast %10 : vector<1x128xf32> to vector<24x128xf32>
    %12 = arith.addf %9, %11 : vector<24x128xf32>
    %c0_11 = arith.constant 0 : index
    %c0_12 = arith.constant 0 : index
    %13 = vector.load %arg6[%c0_11, %c0_12] : memref<24x128xf32, #tpu.memory_space<vmem>>, vector<24x128xf32>
    tpu.vector_store %arg6[%c0_11, %c0_12], %12 {strides = array<i32>} : memref<24x128xf32, #tpu.memory_space<vmem>>, vector<24x128xf32>,
    return
  }
  func.func @transform_0(%arg0: i32) -> (i32, i32) {
    %c0_i32 = arith.constant 0 : i32
    %c0_i32_0 = arith.constant 0 : i32
    return %arg0, %c0_i32 : i32, i32
  }
  func.func @transform_1(%arg0: i32) -> (i32, i32) {
    %c0_i32 = arith.constant 0 : i32
    %c0_i32_0 = arith.constant 0 : i32
    %c0_i32_1 = arith.constant 0 : i32
    return %c0_i32, %c0_i32_0 : i32, i32
  }
  func.func @transform_2(%arg0: i32) -> (i32, i32) {
    %c0_i32 = arith.constant 0 : i32
    %c0_i32_0 = arith.constant 0 : i32
    %c0_i32_1 = arith.constant 0 : i32
    return %c0_i32, %c0_i32_0 : i32, i32
  }
  func.func @transform_3(%arg0: i32) -> (i32, i32) {
    %c0_i32 = arith.constant 0 : i32
    %c0_i32_0 = arith.constant 0 : i32
    %c0_i32_1 = arith.constant 0 : i32
    return %c0_i32, %c0_i32_0 : i32, i32
  }
  func.func @transform_4(%arg0: i32) -> (i32, i32) {
    %c0_i32 = arith.constant 0 : i32
    %c0_i32_0 = arith.constant 0 : i32
    %c0_i32_1 = arith.constant 0 : i32
    return %c0_i32, %c0_i32_0 : i32, i32
  }
  func.func @transform_5(%arg0: i32) -> (i32, i32) {
    %c0_i32 = arith.constant 0 : i32
    %c0_i32_0 = arith.constant 0 : i32
    return %arg0, %c0_i32 : i32, i32
  }
}

module attributes {stable_mosaic.version = 11 : i64} {
  func.func @_mlp_kernel_resident(%arg0: i32, %arg1: memref<24x128xf32, #tpu.memory_space<vmem>>, %arg2: memref<128x256xf32, #tpu.memory_space<vmem>>, %arg3: memref<1x256xf32, #tpu.memory_space<vmem>>, %arg4: memref<256x128xf32, #tpu.memory_space<vmem>>, %arg5: memref<1x128xf32, #tpu.memory_space<vmem>>, %arg6: memref<24x128xf32, #tpu.memory_space<vmem>>) attributes {dimension_semantics = [#tpu.dimension_semantics<parallel>], iteration_bounds = array<i64: 1>, scalar_prefetch = 0 : i64, scratch_operands = 0 : i64, tpu.core_type = #tpu.core_type<tc>, window_params = [{transform_indices = @transform_0, window_bounds = array<i64: 24, 128>}, {pipeline_mode = #tpu.pipeline_mode<synchronous>, transform_indices = @transform_1, window_bounds = array<i64: 128, 256>}, {pipeline_mode = #tpu.pipeline_mode<synchronous>, transform_indices = @transform_2, window_bounds = array<i64: 1, 256>}, {pipeline_mode = #tpu.pipeline_mode<synchronous>, transform_indices = @transform_3, window_bounds = array<i64: 256, 128>}, {pipeline_mode = #tpu.pipeline_mode<synchronous>, transform_indices = @transform_4, window_bounds = array<i64: 1, 128>}, {transform_indices = @transform_5, window_bounds = array<i64: 24, 128>}]} {
    %c0 = arith.constant 0 : index
    %c0_0 = arith.constant 0 : index
    %0 = vector.load %arg1[%c0, %c0_0] : memref<24x128xf32, #tpu.memory_space<vmem>>, vector<24x128xf32>
    %c0_1 = arith.constant 0 : index
    %c0_2 = arith.constant 0 : index
    %1 = vector.load %arg2[%c0_1, %c0_2] : memref<128x256xf32, #tpu.memory_space<vmem>>, vector<128x256xf32>
    %cst = arith.constant dense<0.000000e+00> : vector<24x256xf32>
    %2 = tpu.matmul %0, %1, %cst {dimension_numbers = #tpu.dot_dimension_numbers<[1], [0], [0], [1], [0, 0, 1, 1], [], []>} : vector<24x128xf32>, vector<128x256xf32>, vector<24x256xf32> -> vector<24x256xf32>
    %c0_3 = arith.constant 0 : index
    %c0_4 = arith.constant 0 : index
    %3 = vector.load %arg3[%c0_3, %c0_4] : memref<1x256xf32, #tpu.memory_space<vmem>>, vector<1x256xf32>
    %4 = vector.broadcast %3 : vector<1x256xf32> to vector<24x256xf32>
    %5 = arith.addf %2, %4 : vector<24x256xf32>
    %cst_5 = arith.constant 0.000000e+00 : f32
    %6 = vector.broadcast %cst_5 : f32 to vector<24x256xf32>
    %7 = arith.maximumf %5, %6 : vector<24x256xf32>
    %c0_6 = arith.constant 0 : index
    %c0_7 = arith.constant 0 : index
    %8 = vector.load %arg4[%c0_6, %c0_7] : memref<256x128xf32, #tpu.memory_space<vmem>>, vector<256x128xf32>
    %cst_8 = arith.constant dense<0.000000e+00> : vector<24x128xf32>
    %9 = tpu.matmul %7, %8, %cst_8 {dimension_numbers = #tpu.dot_dimension_numbers<[1], [0], [0], [1], [0, 0, 1, 1], [], []>} : vector<24x256xf32>, vector<256x128xf32>, vector<24x128xf32> -> vector<24x128xf32>
    %c0_9 = arith.constant 0 : index
    %c0_10 = arith.constant 0 : index
    %10 = vector.load %arg5[%c0_9, %c0_10] : memref<1x128xf32, #tpu.memory_space<vmem>>, vector<1x128xf32>
    %11 = vector.broadcast %10 : vector<1x128xf32> to vector<24x128xf32>
    %12 = arith.addf %9, %11 : vector<24x128xf32>
    %c0_11 = arith.constant 0 : index
    %c0_12 = arith.constant 0 : index
    %13 = vector.load %arg6[%c0_11, %c0_12] : memref<24x128xf32, #tpu.memory_space<vmem>>, vector<24x128xf32>
    tpu.vector_store %arg6[%c0_11, %c0_12], %12 {strides = array<i32>} : memref<24x128xf32, #tpu.memory_space<vmem>>, vector<24x128xf32>,
    return
  }
  func.func @transform_0(%arg0: i32) -> (i32, i32) {
    %c0_i32 = arith.constant 0 : i32
    %c0_i32_0 = arith.constant 0 : i32
    return %arg0, %c0_i32 : i32, i32
  }
  func.func @transform_1(%arg0: i32) -> (i32, i32) {
    %c0_i32 = arith.constant 0 : i32
    %c0_i32_0 = arith.constant 0 : i32
    %c0_i32_1 = arith.constant 0 : i32
    return %c0_i32, %c0_i32_0 : i32, i32
  }
  func.func @transform_2(%arg0: i32) -> (i32, i32) {
    %c0_i32 = arith.constant 0 : i32
    %c0_i32_0 = arith.constant 0 : i32
    %c0_i32_1 = arith.constant 0 : i32
    return %c0_i32, %c0_i32_0 : i32, i32
  }
  func.func @transform_3(%arg0: i32) -> (i32, i32) {
    %c0_i32 = arith.constant 0 : i32
    %c0_i32_0 = arith.constant 0 : i32
    %c0_i32_1 = arith.constant 0 : i32
    return %c0_i32, %c0_i32_0 : i32, i32
  }
  func.func @transform_4(%arg0: i32) -> (i32, i32) {
    %c0_i32 = arith.constant 0 : i32
    %c0_i32_0 = arith.constant 0 : i32
    %c0_i32_1 = arith.constant 0 : i32
    return %c0_i32, %c0_i32_0 : i32, i32
  }
  func.func @transform_5(%arg0: i32) -> (i32, i32) {
    %c0_i32 = arith.constant 0 : i32
    %c0_i32_0 = arith.constant 0 : i32
    return %arg0, %c0_i32 : i32, i32
  }
}

</mosaic_0001>

<bundles_post_ra>
// kernel: tpu_custom_call.1
= control target key start
LH: loop header
LB: loop body
LE: loop exit
PB: predicated region body
PF: predicated region fallthrough
CT: control target
= control target key end

     0   :  { %10 = vsyncpa [#allocation3], 0  ;;  %s497_s0 = inlined_call_operand.hbm [shape: f32[24,128], index: 0, kind: input, shape index: {}]   ;;  %s498_s1 = inlined_call_operand.hbm [shape: f32[128,256], index: 1, kind: input, shape index: {}]   ;;  %s499_s2 = inlined_call_operand.hbm [shape: f32[1,256], index: 2, kind: input, shape index: {}]   ;;  %s500_s3 = inlined_call_operand.hbm [shape: f32[256,128], index: 3, kind: input, shape index: {}]   ;;  %s501_s4 = inlined_call_operand.vmem [shape: f32[1,128], index: 4, kind: input, shape index: {}]   ;;  %s502_s5 = inlined_call_operand.hbm [shape: f32[24,128], index: 5, kind: output, shape index: {}]  }
   0x1   :  { %11 = vsyncpa [#allocation6], 0 }
   0x2   :  { %12 = vsyncpa [#allocation9], 0  ;;  %s31_s20 = sshll.u32 %s498_s1, 4  ;;  %s32_s20 = int_to_ptr.hbm [resolvable:$true] %s31_s20 }
   0x3   :  { %13 = vsyncpa [#allocation4], 0  ;;  %s431_s21 = smov [#allocation5]   ;;  %s18_s25 = sshll.u32 %s497_s0, 4  ;;  %s19_s25 = int_to_ptr.hbm [resolvable:$true] %s18_s25 }
   0x4   :  { %s33_s22 = sshll.u32 %s431_s21, 4  ;;  %s432_s26 = smov 256   ;;  %s34_s22 = int_to_ptr.vmem [resolvable:$true] %s33_s22 }
   0x5   :  { %s433_s27 = smov 16   ;;  %s434_s28 = smov [#allocation2]  }
   0x6   :  { %39 = dma.hbm_to_vmem [thread:$0]  %s32_s20, 4096, %s34_s22, [#allocation6], %s432_s26, %s432_s26, %s433_s27  }
   0x7   :  { %s20_s29 = sshll.u32 %s434_s28, 4  ;;  %s435_s30 = smov 128   ;;  %s21_s29 = int_to_ptr.vmem [resolvable:$true] %s20_s29 }
   0x8   :  { %s436_s6 = smov 8   ;;  %s45_s8 = sshll.u32 %s499_s2, 4  ;;  %s46_s8 = int_to_ptr.hbm [resolvable:$true] %s45_s8 }
   0x9   :  { %26 = dma.hbm_to_vmem [thread:$0]  %s19_s25, 384, %s21_s29, [#allocation3], %s435_s30, %s435_s30, %s436_s6  }
   0xa   :  { %s437_s9 = smov [#allocation7]   ;;  %s55_s12 = sshll.u32 %s500_s3, 4  ;;  %s56_s12 = int_to_ptr.hbm [resolvable:$true] %s55_s12 }
   0xb   :  { %s47_s0 = sshll.u32 %s437_s9, 4  ;;  %s438_s13 = smov [#allocation8]   ;;  %s48_s0 = int_to_ptr.vmem [resolvable:$true] %s47_s0 }
   0xc   :  { %50 = dma.hbm_to_vmem [thread:$0]  %s46_s8, 32, %s48_s0, [#allocation6]  }
   0xd   :  { %s57_s14 = sshll.u32 %s438_s13, 4  ;;  %s58_s14 = int_to_ptr.vmem [resolvable:$true] %s57_s14 }
   0xe   :  { %63 = dma.hbm_to_vmem [thread:$0]  %s56_s12, 4096, %s58_s14, [#allocation9], %s435_s30, %s435_s30, %s436_s6  }
   0xf   :  { %423 = dma.done.wait [#allocation3], 384  }
  0x10   :  { %424 = vsyncadd [#allocation3], 4294966912 }
  0x11   :  { %425 = dma.done.wait [#allocation6], 4128  }
  0x12   :  { %426 = vsyncadd [#allocation6], 4294963168 }
  0x13   :  { %427 = dma.done.wait [#allocation9], 4096  }
  0x14   :  { %428 = vsyncadd [#allocation9], 4294963200  ;;  %v115_v0 = vld [vmem:[#allocation5 + $0xf0] sm:$0xff]  ;;  %v113_v1 = vld [vmem:[#allocation5 + $0xe0] sm:$0xff]  ;;  %s439_s15 = smov [#allocation10]   ;;  %s278_s19 = sshll.u32 %s502_s5, 4  ;;  %s279_s19 = int_to_ptr.hbm [resolvable:$true] %s278_s19 }
  0x15   :  { %v116_v2 = vld [vmem:[#allocation5 + $0xf8] sm:$0xff]  ;;  %123 = vmatpush.msra.mxu0 %v115_v0  ;;  %v114_v3 = vld [vmem:[#allocation5 + $0xe8] sm:$0xff]  ;;  %v111_v4 = vld [vmem:[#allocation5 + $0xd0] sm:$0xff]  ;;  %s276_s16 = sshll.u32 %s439_s15, 4  ;;  %s277_s16 = int_to_ptr.vmem [resolvable:$true] %s276_s16 }
  0x16   :  { %149 = vmatpush.msra.mxu1 %v116_v2  ;;  %v112_v5 = vld [vmem:[#allocation5 + $0xd8] sm:$0xff]  ;;  %v109_v6 = vld [vmem:[#allocation5 + $0xc0] sm:$0xff]  ;;  %v110_v7 = vld [vmem:[#allocation5 + $0xc8] sm:$0xff] }
  0x17   :  { %124 = vmatpush.msra.mxu0 %v113_v1  ;;  %v107_v8 = vld [vmem:[#allocation5 + $0xb0] sm:$0xff]  ;;  %v108_v9 = vld [vmem:[#allocation5 + $0xb8] sm:$0xff]  ;;  %v105_v10 = vld [vmem:[#allocation5 + $0xa0] sm:$0xff] }
  0x18   :  { %150 = vmatpush.msra.mxu1 %v114_v3  ;;  %v106_v11 = vld [vmem:[#allocation5 + $0xa8] sm:$0xff]  ;;  %v103_v12 = vld [vmem:[#allocation5 + $0x90] sm:$0xff]  ;;  %v104_v13 = vld [vmem:[#allocation5 + $0x98] sm:$0xff] }
  0x19   :  { %125 = vmatpush.msra.mxu0 %v111_v4  ;;  %v101_v14 = vld [vmem:[#allocation5 + $0x80] sm:$0xff]  ;;  %v102_v15 = vld [vmem:[#allocation5 + $0x88] sm:$0xff]  ;;  %v99_v16 = vld [vmem:[#allocation5 + $0x70] sm:$0xff] }
  0x1a   :  { %151 = vmatpush.msra.mxu1 %v112_v5  ;;  %v100_v17 = vld [vmem:[#allocation5 + $0x78] sm:$0xff]  ;;  %v97_v18 = vld [vmem:[#allocation5 + $0x60] sm:$0xff]  ;;  %v98_v19 = vld [vmem:[#allocation5 + $0x68] sm:$0xff] }
  0x1b   :  { %126 = vmatpush.msra.mxu0 %v109_v6  ;;  %v196_v20 = vld [vmem:[#allocation8 + $0x78] sm:$0xff]  ;;  %v195_v22 = vld [vmem:[#allocation8 + $0x70] sm:$0xff]  ;;  %v194_v26 = vld [vmem:[#allocation8 + $0x68] sm:$0xff] }
  0x1c   :  { %152 = vmatpush.msra.mxu1 %v110_v7  ;;  %v212_v21 = vld [vmem:[#allocation8 + $0xf8] sm:$0xff]  ;;  %v211_v23 = vld [vmem:[#allocation8 + $0xf0] sm:$0xff]  ;;  %217 = vmatpush.msra.mxu2 %v196_v20  ;;  %v210_v27 = vld [vmem:[#allocation8 + $0xe8] sm:$0xff] }
  0x1d   :  { %127 = vmatpush.msra.mxu0 %v107_v8  ;;  %v95_v24 = vld [vmem:[#allocation5 + $0x50] sm:$0xff]  ;;  %v96_v25 = vld [vmem:[#allocation5 + $0x58] sm:$0xff]  ;;  %243 = vmatpush.msra.mxu3 %v212_v21  ;;  %v93_v28 = vld [vmem:[#allocation5 + $0x40] sm:$0xff] }
  0x1e   :  { %153 = vmatpush.msra.mxu1 %v108_v9  ;;  %v94_v29 = vld [vmem:[#allocation5 + $0x48] sm:$0xff]  ;;  %218 = vmatpush.msra.mxu2 %v195_v22  ;;  %v91_v32 = vld [vmem:[#allocation5 + $0x30] sm:$0xff]  ;;  %v92_v33 = vld [vmem:[#allocation5 + $0x38] sm:$0xff] }
  0x1f   :  { %128 = vmatpush.msra.mxu0 %v105_v10  ;;  %244 = vmatpush.msra.mxu3 %v211_v23  ;;  %v193_v30 = vld [vmem:[#allocation8 + $0x60] sm:$0xff]  ;;  %v192_v34 = vld [vmem:[#allocation8 + $0x58] sm:$0xff]  ;;  %v191_v38 = vld [vmem:[#allocation8 + $0x50] sm:$0xff] }
  0x20   :  { %154 = vmatpush.msra.mxu1 %v106_v11  ;;  %v209_v31 = vld [vmem:[#allocation8 + $0xe0] sm:$0xff]  ;;  %219 = vmatpush.msra.mxu2 %v194_v26  ;;  %v208_v35 = vld [vmem:[#allocation8 + $0xd8] sm:$0xff]  ;;  %v207_v39 = vld [vmem:[#allocation8 + $0xd0] sm:$0xff] }
  0x21   :  { %129 = vmatpush.msra.mxu0 %v103_v12  ;;  %245 = vmatpush.msra.mxu3 %v210_v27  ;;  %v89_v36 = vld [vmem:[#allocation5 + $0x20] sm:$0xff]  ;;  %v90_v37 = vld [vmem:[#allocation5 + $0x28] sm:$0xff]  ;;  %v87_v40 = vld [vmem:[#allocation5 + $0x10] sm:$0xff] }
  0x22   :  { %155 = vmatpush.msra.mxu1 %v104_v13  ;;  %220 = vmatpush.msra.mxu2 %v193_v30  ;;  %v88_v41 = vld [vmem:[#allocation5 + $0x18] sm:$0xff]  ;;  %v190_v42 = vld [vmem:[#allocation8 + $0x48] sm:$0xff]  ;;  %v85_v44 = vld [vmem:[#allocation5] sm:$0xff] }
  0x23   :  { %130 = vmatpush.msra.mxu0 %v101_v14  ;;  %246 = vmatpush.msra.mxu3 %v209_v31  ;;  %v206_v43 = vld [vmem:[#allocation8 + $0xc8] sm:$0xff]  ;;  %v189_v47 = vld [vmem:[#allocation8 + $0x40] sm:$0xff]  ;;  %v188_v49 = vld [vmem:[#allocation8 + $0x38] sm:$0xff] }
  0x24   :  { %156 = vmatpush.msra.mxu1 %v102_v15  ;;  %221 = vmatpush.msra.mxu2 %v192_v34  ;;  %v86_v45 = vld [vmem:[#allocation5 + $0x8] sm:$0xff]  ;;  %v204_v50 = vld [vmem:[#allocation8 + $0xb8] sm:$0xff]  ;;  %v187_v51 = vld [vmem:[#allocation8 + $0x30] sm:$0xff] }
  0x25   :  { %131 = vmatpush.msra.mxu0 %v99_v16  ;;  %247 = vmatpush.msra.mxu3 %v208_v35  ;;  %v82_v46 = vld [vmem:[#allocation2] sm:$0xff]  ;;  %v203_v52 = vld [vmem:[#allocation8 + $0xb0] sm:$0xff]  ;;  %v184_v58 = vld [vmem:[#allocation8 + $0x18] sm:$0xff] }
  0x26   :  { %157 = vmatpush.msra.mxu1 %v100_v17  ;;  %222 = vmatpush.msra.mxu2 %v191_v38  ;;  %v205_v48 = vld [vmem:[#allocation8 + $0xc0] sm:$0xff]  ;;  %v186_v53 = vld [vmem:[#allocation8 + $0x28] sm:$0xff]  ;;  %v84_v59 = vld [vmem:[#allocation2 + $0x10] sm:$0xff] }
  0x27   :  { %132 = vmatpush.msra.mxu0 %v97_v18  ;;  %248 = vmatpush.msra.mxu3 %v207_v39  ;;  %v202_v54 = vld [vmem:[#allocation8 + $0xa8] sm:$0xff]  ;;  %v185_v56 = vld [vmem:[#allocation8 + $0x20] sm:$0xff]  ;;  %v183_v60 = vld [vmem:[#allocation8 + $0x10] sm:$0xff] }
  0x28   :  { %158 = vmatpush.msra.mxu1 %v98_v19  ;;  %223 = vmatpush.msra.mxu2 %v190_v42  ;;  %v83_v55 = vld [vmem:[#allocation2 + $0x8] sm:$0xff]  ;;  %v201_v57 = vld [vmem:[#allocation8 + $0xa0] sm:$0xff]  ;;  %v200_v61 = vld [vmem:[#allocation8 + $0x98] sm:$0xff] }
  0x29   :  { %133 = vmatpush.msra.mxu0 %v95_v24  ;;  %249 = vmatpush.msra.mxu3 %v206_v43  ;;  %v182_v62 = vld [vmem:[#allocation8 + $0x8] sm:$0xff]  ;;  %v199_v63 = vld [vmem:[#allocation8 + $0x90] sm:$0xff]  ;;  %v181_v0 = vld [vmem:[#allocation8] sm:$0xff] }
  0x2a   :  { %159 = vmatpush.msra.mxu1 %v96_v25  ;;  %224 = vmatpush.msra.mxu2 %v189_v47  ;;  %v198_v1 = vld [vmem:[#allocation8 + $0x88] sm:$0xff]  ;;  %v197_v2 = vld [vmem:[#allocation8 + $0x80] sm:$0xff]  ;;  %v117_v3 = vld [vmem:[#allocation7] sm:$0x3] }
  0x2b   :  { %134 = vmatpush.msra.mxu0 %v93_v28  ;;  %250 = vmatpush.msra.mxu3 %v205_v48  ;;  %v119_v4 = vperm.slane %v117_v3, 0  ;;  %v120_v5 = vperm.slane %v117_v3, 1  ;;  %v302_v24 = vld [vmem:[%s501_s4] ss:$0 sm:$0xff] }
  0x2c   :  { %160 = vmatpush.msra.mxu1 %v94_v29  ;;  %225 = vmatpush.msra.mxu2 %v188_v49 }
  0x2d   :  { %135 = vmatpush.msra.mxu0 %v91_v32  ;;  %251 = vmatpush.msra.mxu3 %v204_v50 }
  0x2e   :  { %161 = vmatpush.msra.mxu1 %v92_v33  ;;  %226 = vmatpush.msra.mxu2 %v187_v51 }
  0x2f   :  { %136 = vmatpush.msra.mxu0 %v89_v36  ;;  %252 = vmatpush.msra.mxu3 %v203_v52 }
  0x30   :  { %162 = vmatpush.msra.mxu1 %v90_v37  ;;  %227 = vmatpush.msra.mxu2 %v186_v53 }
  0x31   :  { %137 = vmatpush.msra.mxu0 %v87_v40  ;;  %253 = vmatpush.msra.mxu3 %v202_v54 }
  0x32   :  { %163 = vmatpush.msra.mxu1 %v88_v41  ;;  %228 = vmatpush.msra.mxu2 %v185_v56 }
  0x33   :  { %138 = vmatpush.msra.mxu0 %v85_v44  ;;  %254 = vmatpush.msra.mxu3 %v201_v57 }
  0x34   :  { %164 = vmatpush.msra.mxu1 %v86_v45  ;;  %139 = vmatmul.f32.vlgmr.msra.gmra.mxu0 %v82_v46 }
  0x35   :  { %165 = vmatmul.f32.vlgmr.msra.gmra.mxu1 %v82_v46  ;;  %229 = vmatpush.msra.mxu2 %v184_v58 }
  0x36   :  { %255 = vmatpush.msra.mxu3 %v200_v61 }
  0x37   :  { %230 = vmatpush.msra.mxu2 %v183_v60 }
  0x38   :  { %256 = vmatpush.msra.mxu3 %v199_v63 }
  0x39   :  { %231 = vmatpush.msra.mxu2 %v182_v62 }
  0x3a   :  { %257 = vmatpush.msra.mxu3 %v198_v1 }
  0x3b   :  { %232 = vmatpush.msra.mxu2 %v181_v0 }
  0x3c   :  { %142 = vmatmul.f32.gmra.mxu0 %v83_v55  ;;  %258 = vmatpush.msra.mxu3 %v197_v2 }
  0x3d   :  { %168 = vmatmul.f32.gmra.mxu1 %v83_v55 }
  0x44   :  { %145 = vmatmul.f32.gmra.mxu0 %v84_v59 }
  0x45   :  { %171 = vmatmul.f32.gmra.mxu1 %v84_v59 }
  0xb1   :  { %v140_v6 = vpop.f32.mrf.mxu0 }
  0xb2   :  { %v166_v7 = vpop.f32.mrf.mxu1  ;;  %v141_v8 = vadd.f32 %v140_v6, %v119_v4 }
  0xb3   :  { %v167_v9 = vadd.f32 %v166_v7, %v120_v5 }
  0xb4   :  { %v175_v10 = vmax.f32 %v141_v8, 0.0 }
  0xb5   :  { %v176_v11 = vmax.f32 %v167_v9, 0.0 }
  0xb6   :  { %233 = vmatmul.f32.vlgmr.msra.gmra.mxu2 %v175_v10 }
  0xb7   :  { %259 = vmatmul.f32.vlgmr.msra.gmra.mxu3 %v176_v11 }
  0xb9   :  { %v143_v12 = vpop.f32.mrf.mxu0 }
  0xba   :  { %v169_v13 = vpop.f32.mrf.mxu1  ;;  %v144_v14 = vadd.f32 %v143_v12, %v119_v4 }
  0xbb   :  { %v170_v15 = vadd.f32 %v169_v13, %v120_v5 }
  0xbc   :  { %v177_v16 = vmax.f32 %v144_v14, 0.0 }
  0xbd   :  { %v178_v17 = vmax.f32 %v170_v15, 0.0 }
  0xbe   :  { %236 = vmatmul.f32.gmra.mxu2 %v177_v16 }
  0xbf   :  { %262 = vmatmul.f32.gmra.mxu3 %v178_v17 }
  0xc1   :  { %v146_v18 = vpop.f32.mrf.mxu0 }
  0xc2   :  { %v172_v19 = vpop.f32.mrf.mxu1  ;;  %v147_v20 = vadd.f32 %v146_v18, %v119_v4 }
  0xc3   :  { %v173_v21 = vadd.f32 %v172_v19, %v120_v5 }
  0xc4   :  { %v179_v22 = vmax.f32 %v147_v20, 0.0 }
  0xc5   :  { %v180_v23 = vmax.f32 %v173_v21, 0.0 }
  0xc6   :  { %239 = vmatmul.f32.gmra.mxu2 %v179_v22 }
  0xc7   :  { %265 = vmatmul.f32.gmra.mxu3 %v180_v23 }
 0x139   :  { %v234_v25 = vpop.f32.mrf.mxu2 }
 0x13a   :  { %v260_v26 = vpop.f32.mrf.mxu3  ;;  %v235_v27 = vadd.f32 %v302_v24, %v234_v25 }
 0x13c   :  { %v261_v28 = vadd.f32 %v260_v26, %v235_v27 }
 0x13e   :  { %269 = vst [vmem:[#allocation10] sm:$0xff] %v261_v28 }
 0x141   :  { %v237_v29 = vpop.f32.mrf.mxu2 }
 0x142   :  { %v263_v30 = vpop.f32.mrf.mxu3  ;;  %v238_v31 = vadd.f32 %v302_v24, %v237_v29 }
 0x144   :  { %v264_v32 = vadd.f32 %v263_v30, %v238_v31 }
 0x146   :  { %270 = vst [vmem:[#allocation10 + $0x8] sm:$0xff] %v264_v32 }
 0x149   :  { %v240_v33 = vpop.f32.mrf.mxu2 }
 0x14a   :  { %v266_v34 = vpop.f32.mrf.mxu3  ;;  %v241_v35 = vadd.f32 %v302_v24, %v240_v33 }
 0x14c   :  { %v267_v36 = vadd.f32 %v266_v34, %v241_v35 }
 0x14e   :  { %271 = vst [vmem:[#allocation10 + $0x10] sm:$0xff] %v267_v36 }
 0x14f   :  { %284 = dma.vmem_to_hbm [thread:$0]  %s277_s16, 384, %s279_s19, [#allocation4], %s435_s30, %s435_s30, %s436_s6  }
 0x150   :  { %429 = dma.done.wait [#allocation4], 384  }
 0x151   :  { %430 = vsyncadd [#allocation4], 4294966912 }
 0x152   :  { %289 = vsyncpa [#allocation3], 1 }
 0x153   :  { %290 = vsyncpa [#allocation6], 1 }
 0x154   :  { %291 = vsyncpa [#allocation9], 1 }
 0x155   :  { %292 = vsyncpa [#allocation4], 1 }

// kernel: tpu_custom_call.1
= control target key start
LH: loop header
LB: loop body
LE: loop exit
PB: predicated region body
PF: predicated region fallthrough
CT: control target
= control target key end

     0   :  { %10 = vsyncpa [#allocation3], 0  ;;  %s497_s0 = inlined_call_operand.hbm [shape: f32[24,128], index: 0, kind: input, shape index: {}]   ;;  %s498_s1 = inlined_call_operand.hbm [shape: f32[128,256], index: 1, kind: input, shape index: {}]   ;;  %s499_s2 = inlined_call_operand.hbm [shape: f32[1,256], index: 2, kind: input, shape index: {}]   ;;  %s500_s3 = inlined_call_operand.hbm [shape: f32[256,128], index: 3, kind: input, shape index: {}]   ;;  %s501_s4 = inlined_call_operand.vmem [shape: f32[1,128], index: 4, kind: input, shape index: {}]   ;;  %s502_s5 = inlined_call_operand.hbm [shape: f32[24,128], index: 5, kind: output, shape index: {}]  }
   0x1   :  { %11 = vsyncpa [#allocation6], 0 }
   0x2   :  { %12 = vsyncpa [#allocation9], 0  ;;  %s31_s20 = sshll.u32 %s498_s1, 4  ;;  %s32_s20 = int_to_ptr.hbm [resolvable:$true] %s31_s20 }
   0x3   :  { %13 = vsyncpa [#allocation4], 0  ;;  %s431_s21 = smov [#allocation5]   ;;  %s18_s25 = sshll.u32 %s497_s0, 4  ;;  %s19_s25 = int_to_ptr.hbm [resolvable:$true] %s18_s25 }
   0x4   :  { %s33_s22 = sshll.u32 %s431_s21, 4  ;;  %s432_s26 = smov 256   ;;  %s34_s22 = int_to_ptr.vmem [resolvable:$true] %s33_s22 }
   0x5   :  { %s433_s27 = smov 16   ;;  %s434_s28 = smov [#allocation2]  }
   0x6   :  { %39 = dma.hbm_to_vmem [thread:$0]  %s32_s20, 4096, %s34_s22, [#allocation6], %s432_s26, %s432_s26, %s433_s27  }
   0x7   :  { %s20_s29 = sshll.u32 %s434_s28, 4  ;;  %s435_s30 = smov 128   ;;  %s21_s29 = int_to_ptr.vmem [resolvable:$true] %s20_s29 }
   0x8   :  { %s436_s6 = smov 8   ;;  %s45_s8 = sshll.u32 %s499_s2, 4  ;;  %s46_s8 = int_to_ptr.hbm [resolvable:$true] %s45_s8 }
   0x9   :  { %26 = dma.hbm_to_vmem [thread:$0]  %s19_s25, 384, %s21_s29, [#allocation3], %s435_s30, %s435_s30, %s436_s6  }
   0xa   :  { %s437_s9 = smov [#allocation7]   ;;  %s55_s12 = sshll.u32 %s500_s3, 4  ;;  %s56_s12 = int_to_ptr.hbm [resolvable:$true] %s55_s12 }
   0xb   :  { %s47_s0 = sshll.u32 %s437_s9, 4  ;;  %s438_s13 = smov [#allocation8]   ;;  %s48_s0 = int_to_ptr.vmem [resolvable:$true] %s47_s0 }
   0xc   :  { %50 = dma.hbm_to_vmem [thread:$0]  %s46_s8, 32, %s48_s0, [#allocation6]  }
   0xd   :  { %s57_s14 = sshll.u32 %s438_s13, 4  ;;  %s58_s14 = int_to_ptr.vmem [resolvable:$true] %s57_s14 }
   0xe   :  { %63 = dma.hbm_to_vmem [thread:$0]  %s56_s12, 4096, %s58_s14, [#allocation9], %s435_s30, %s435_s30, %s436_s6  }
   0xf   :  { %423 = dma.done.wait [#allocation3], 384  }
  0x10   :  { %424 = vsyncadd [#allocation3], 4294966912 }
  0x11   :  { %425 = dma.done.wait [#allocation6], 4128  }
  0x12   :  { %426 = vsyncadd [#allocation6], 4294963168 }
  0x13   :  { %427 = dma.done.wait [#allocation9], 4096  }
  0x14   :  { %428 = vsyncadd [#allocation9], 4294963200  ;;  %v115_v0 = vld [vmem:[#allocation5 + $0xf0] sm:$0xff]  ;;  %v113_v1 = vld [vmem:[#allocation5 + $0xe0] sm:$0xff]  ;;  %s439_s15 = smov [#allocation10]   ;;  %s278_s19 = sshll.u32 %s502_s5, 4  ;;  %s279_s19 = int_to_ptr.hbm [resolvable:$true] %s278_s19 }
  0x15   :  { %v116_v2 = vld [vmem:[#allocation5 + $0xf8] sm:$0xff]  ;;  %123 = vmatpush.msra.mxu0 %v115_v0  ;;  %v114_v3 = vld [vmem:[#allocation5 + $0xe8] sm:$0xff]  ;;  %v111_v4 = vld [vmem:[#allocation5 + $0xd0] sm:$0xff]  ;;  %s276_s16 = sshll.u32 %s439_s15, 4  ;;  %s277_s16 = int_to_ptr.vmem [resolvable:$true] %s276_s16 }
  0x16   :  { %149 = vmatpush.msra.mxu1 %v116_v2  ;;  %v112_v5 = vld [vmem:[#allocation5 + $0xd8] sm:$0xff]  ;;  %v109_v6 = vld [vmem:[#allocation5 + $0xc0] sm:$0xff]  ;;  %v110_v7 = vld [vmem:[#allocation5 + $0xc8] sm:$0xff] }
  0x17   :  { %124 = vmatpush.msra.mxu0 %v113_v1  ;;  %v107_v8 = vld [vmem:[#allocation5 + $0xb0] sm:$0xff]  ;;  %v108_v9 = vld [vmem:[#allocation5 + $0xb8] sm:$0xff]  ;;  %v105_v10 = vld [vmem:[#allocation5 + $0xa0] sm:$0xff] }
  0x18   :  { %150 = vmatpush.msra.mxu1 %v114_v3  ;;  %v106_v11 = vld [vmem:[#allocation5 + $0xa8] sm:$0xff]  ;;  %v103_v12 = vld [vmem:[#allocation5 + $0x90] sm:$0xff]  ;;  %v104_v13 = vld [vmem:[#allocation5 + $0x98] sm:$0xff] }
  0x19   :  { %125 = vmatpush.msra.mxu0 %v111_v4  ;;  %v101_v14 = vld [vmem:[#allocation5 + $0x80] sm:$0xff]  ;;  %v102_v15 = vld [vmem:[#allocation5 + $0x88] sm:$0xff]  ;;  %v99_v16 = vld [vmem:[#allocation5 + $0x70] sm:$0xff] }
  0x1a   :  { %151 = vmatpush.msra.mxu1 %v112_v5  ;;  %v100_v17 = vld [vmem:[#allocation5 + $0x78] sm:$0xff]  ;;  %v97_v18 = vld [vmem:[#allocation5 + $0x60] sm:$0xff]  ;;  %v98_v19 = vld [vmem:[#allocation5 + $0x68] sm:$0xff] }
  0x1b   :  { %126 = vmatpush.msra.mxu0 %v109_v6  ;;  %v196_v20 = vld [vmem:[#allocation8 + $0x78] sm:$0xff]  ;;  %v195_v22 = vld [vmem:[#allocation8 + $0x70] sm:$0xff]  ;;  %v194_v26 = vld [vmem:[#allocation8 + $0x68] sm:$0xff] }
  0x1c   :  { %152 = vmatpush.msra.mxu1 %v110_v7  ;;  %v212_v21 = vld [vmem:[#allocation8 + $0xf8] sm:$0xff]  ;;  %v211_v23 = vld [vmem:[#allocation8 + $0xf0] sm:$0xff]  ;;  %217 = vmatpush.msra.mxu2 %v196_v20  ;;  %v210_v27 = vld [vmem:[#allocation8 + $0xe8] sm:$0xff] }
  0x1d   :  { %127 = vmatpush.msra.mxu0 %v107_v8  ;;  %v95_v24 = vld [vmem:[#allocation5 + $0x50] sm:$0xff]  ;;  %v96_v25 = vld [vmem:[#allocation5 + $0x58] sm:$0xff]  ;;  %243 = vmatpush.msra.mxu3 %v212_v21  ;;  %v93_v28 = vld [vmem:[#allocation5 + $0x40] sm:$0xff] }
  0x1e   :  { %153 = vmatpush.msra.mxu1 %v108_v9  ;;  %v94_v29 = vld [vmem:[#allocation5 + $0x48] sm:$0xff]  ;;  %218 = vmatpush.msra.mxu2 %v195_v22  ;;  %v91_v32 = vld [vmem:[#allocation5 + $0x30] sm:$0xff]  ;;  %v92_v33 = vld [vmem:[#allocation5 + $0x38] sm:$0xff] }
  0x1f   :  { %128 = vmatpush.msra.mxu0 %v105_v10  ;;  %244 = vmatpush.msra.mxu3 %v211_v23  ;;  %v193_v30 = vld [vmem:[#allocation8 + $0x60] sm:$0xff]  ;;  %v192_v34 = vld [vmem:[#allocation8 + $0x58] sm:$0xff]  ;;  %v191_v38 = vld [vmem:[#allocation8 + $0x50] sm:$0xff] }
  0x20   :  { %154 = vmatpush.msra.mxu1 %v106_v11  ;;  %v209_v31 = vld [vmem:[#allocation8 + $0xe0] sm:$0xff]  ;;  %219 = vmatpush.msra.mxu2 %v194_v26  ;;  %v208_v35 = vld [vmem:[#allocation8 + $0xd8] sm:$0xff]  ;;  %v207_v39 = vld [vmem:[#allocation8 + $0xd0] sm:$0xff] }
  0x21   :  { %129 = vmatpush.msra.mxu0 %v103_v12  ;;  %245 = vmatpush.msra.mxu3 %v210_v27  ;;  %v89_v36 = vld [vmem:[#allocation5 + $0x20] sm:$0xff]  ;;  %v90_v37 = vld [vmem:[#allocation5 + $0x28] sm:$0xff]  ;;  %v87_v40 = vld [vmem:[#allocation5 + $0x10] sm:$0xff] }
  0x22   :  { %155 = vmatpush.msra.mxu1 %v104_v13  ;;  %220 = vmatpush.msra.mxu2 %v193_v30  ;;  %v88_v41 = vld [vmem:[#allocation5 + $0x18] sm:$0xff]  ;;  %v190_v42 = vld [vmem:[#allocation8 + $0x48] sm:$0xff]  ;;  %v85_v44 = vld [vmem:[#allocation5] sm:$0xff] }
  0x23   :  { %130 = vmatpush.msra.mxu0 %v101_v14  ;;  %246 = vmatpush.msra.mxu3 %v209_v31  ;;  %v206_v43 = vld [vmem:[#allocation8 + $0xc8] sm:$0xff]  ;;  %v189_v47 = vld [vmem:[#allocation8 + $0x40] sm:$0xff]  ;;  %v188_v49 = vld [vmem:[#allocation8 + $0x38] sm:$0xff] }
  0x24   :  { %156 = vmatpush.msra.mxu1 %v102_v15  ;;  %221 = vmatpush.msra.mxu2 %v192_v34  ;;  %v86_v45 = vld [vmem:[#allocation5 + $0x8] sm:$0xff]  ;;  %v204_v50 = vld [vmem:[#allocation8 + $0xb8] sm:$0xff]  ;;  %v187_v51 = vld [vmem:[#allocation8 + $0x30] sm:$0xff] }
  0x25   :  { %131 = vmatpush.msra.mxu0 %v99_v16  ;;  %247 = vmatpush.msra.mxu3 %v208_v35  ;;  %v82_v46 = vld [vmem:[#allocation2] sm:$0xff]  ;;  %v203_v52 = vld [vmem:[#allocation8 + $0xb0] sm:$0xff]  ;;  %v184_v58 = vld [vmem:[#allocation8 + $0x18] sm:$0xff] }
  0x26   :  { %157 = vmatpush.msra.mxu1 %v100_v17  ;;  %222 = vmatpush.msra.mxu2 %v191_v38  ;;  %v205_v48 = vld [vmem:[#allocation8 + $0xc0] sm:$0xff]  ;;  %v186_v53 = vld [vmem:[#allocation8 + $0x28] sm:$0xff]  ;;  %v84_v59 = vld [vmem:[#allocation2 + $0x10] sm:$0xff] }
  0x27   :  { %132 = vmatpush.msra.mxu0 %v97_v18  ;;  %248 = vmatpush.msra.mxu3 %v207_v39  ;;  %v202_v54 = vld [vmem:[#allocation8 + $0xa8] sm:$0xff]  ;;  %v185_v56 = vld [vmem:[#allocation8 + $0x20] sm:$0xff]  ;;  %v183_v60 = vld [vmem:[#allocation8 + $0x10] sm:$0xff] }
  0x28   :  { %158 = vmatpush.msra.mxu1 %v98_v19  ;;  %223 = vmatpush.msra.mxu2 %v190_v42  ;;  %v83_v55 = vld [vmem:[#allocation2 + $0x8] sm:$0xff]  ;;  %v201_v57 = vld [vmem:[#allocation8 + $0xa0] sm:$0xff]  ;;  %v200_v61 = vld [vmem:[#allocation8 + $0x98] sm:$0xff] }
  0x29   :  { %133 = vmatpush.msra.mxu0 %v95_v24  ;;  %249 = vmatpush.msra.mxu3 %v206_v43  ;;  %v182_v62 = vld [vmem:[#allocation8 + $0x8] sm:$0xff]  ;;  %v199_v63 = vld [vmem:[#allocation8 + $0x90] sm:$0xff]  ;;  %v181_v0 = vld [vmem:[#allocation8] sm:$0xff] }
  0x2a   :  { %159 = vmatpush.msra.mxu1 %v96_v25  ;;  %224 = vmatpush.msra.mxu2 %v189_v47  ;;  %v198_v1 = vld [vmem:[#allocation8 + $0x88] sm:$0xff]  ;;  %v197_v2 = vld [vmem:[#allocation8 + $0x80] sm:$0xff]  ;;  %v117_v3 = vld [vmem:[#allocation7] sm:$0x3] }
  0x2b   :  { %134 = vmatpush.msra.mxu0 %v93_v28  ;;  %250 = vmatpush.msra.mxu3 %v205_v48  ;;  %v119_v4 = vperm.slane %v117_v3, 0  ;;  %v120_v5 = vperm.slane %v117_v3, 1  ;;  %v302_v24 = vld [vmem:[%s501_s4] ss:$0 sm:$0xff] }
  0x2c   :  { %160 = vmatpush.msra.mxu1 %v94_v29  ;;  %225 = vmatpush.msra.mxu2 %v188_v49 }
  0x2d   :  { %135 = vmatpush.msra.mxu0 %v91_v32  ;;  %251 = vmatpush.msra.mxu3 %v204_v50 }
  0x2e   :  { %161 = vmatpush.msra.mxu1 %v92_v33  ;;  %226 = vmatpush.msra.mxu2 %v187_v51 }
  0x2f   :  { %136 = vmatpush.msra.mxu0 %v89_v36  ;;  %252 = vmatpush.msra.mxu3 %v203_v52 }
  0x30   :  { %162 = vmatpush.msra.mxu1 %v90_v37  ;;  %227 = vmatpush.msra.mxu2 %v186_v53 }
  0x31   :  { %137 = vmatpush.msra.mxu0 %v87_v40  ;;  %253 = vmatpush.msra.mxu3 %v202_v54 }
  0x32   :  { %163 = vmatpush.msra.mxu1 %v88_v41  ;;  %228 = vmatpush.msra.mxu2 %v185_v56 }
  0x33   :  { %138 = vmatpush.msra.mxu0 %v85_v44  ;;  %254 = vmatpush.msra.mxu3 %v201_v57 }
  0x34   :  { %164 = vmatpush.msra.mxu1 %v86_v45  ;;  %139 = vmatmul.f32.vlgmr.msra.gmra.mxu0 %v82_v46 }
  0x35   :  { %165 = vmatmul.f32.vlgmr.msra.gmra.mxu1 %v82_v46  ;;  %229 = vmatpush.msra.mxu2 %v184_v58 }
  0x36   :  { %255 = vmatpush.msra.mxu3 %v200_v61 }
  0x37   :  { %230 = vmatpush.msra.mxu2 %v183_v60 }
  0x38   :  { %256 = vmatpush.msra.mxu3 %v199_v63 }
  0x39   :  { %231 = vmatpush.msra.mxu2 %v182_v62 }
  0x3a   :  { %257 = vmatpush.msra.mxu3 %v198_v1 }
  0x3b   :  { %232 = vmatpush.msra.mxu2 %v181_v0 }
  0x3c   :  { %142 = vmatmul.f32.gmra.mxu0 %v83_v55  ;;  %258 = vmatpush.msra.mxu3 %v197_v2 }
  0x3d   :  { %168 = vmatmul.f32.gmra.mxu1 %v83_v55 }
  0x44   :  { %145 = vmatmul.f32.gmra.mxu0 %v84_v59 }
  0x45   :  { %171 = vmatmul.f32.gmra.mxu1 %v84_v59 }
  0xb1   :  { %v140_v6 = vpop.f32.mrf.mxu0 }
  0xb2   :  { %v166_v7 = vpop.f32.mrf.mxu1  ;;  %v141_v8 = vadd.f32 %v140_v6, %v119_v4 }
  0xb3   :  { %v167_v9 = vadd.f32 %v166_v7, %v120_v5 }
  0xb4   :  { %v175_v10 = vmax.f32 %v141_v8, 0.0 }
  0xb5   :  { %v176_v11 = vmax.f32 %v167_v9, 0.0 }
  0xb6   :  { %233 = vmatmul.f32.vlgmr.msra.gmra.mxu2 %v175_v10 }
  0xb7   :  { %259 = vmatmul.f32.vlgmr.msra.gmra.mxu3 %v176_v11 }
  0xb9   :  { %v143_v12 = vpop.f32.mrf.mxu0 }
  0xba   :  { %v169_v13 = vpop.f32.mrf.mxu1  ;;  %v144_v14 = vadd.f32 %v143_v12, %v119_v4 }
  0xbb   :  { %v170_v15 = vadd.f32 %v169_v13, %v120_v5 }
  0xbc   :  { %v177_v16 = vmax.f32 %v144_v14, 0.0 }
  0xbd   :  { %v178_v17 = vmax.f32 %v170_v15, 0.0 }
  0xbe   :  { %236 = vmatmul.f32.gmra.mxu2 %v177_v16 }
  0xbf   :  { %262 = vmatmul.f32.gmra.mxu3 %v178_v17 }
  0xc1   :  { %v146_v18 = vpop.f32.mrf.mxu0 }
  0xc2   :  { %v172_v19 = vpop.f32.mrf.mxu1  ;;  %v147_v20 = vadd.f32 %v146_v18, %v119_v4 }
  0xc3   :  { %v173_v21 = vadd.f32 %v172_v19, %v120_v5 }
  0xc4   :  { %v179_v22 = vmax.f32 %v147_v20, 0.0 }
  0xc5   :  { %v180_v23 = vmax.f32 %v173_v21, 0.0 }
  0xc6   :  { %239 = vmatmul.f32.gmra.mxu2 %v179_v22 }
  0xc7   :  { %265 = vmatmul.f32.gmra.mxu3 %v180_v23 }
 0x139   :  { %v234_v25 = vpop.f32.mrf.mxu2 }
 0x13a   :  { %v260_v26 = vpop.f32.mrf.mxu3  ;;  %v235_v27 = vadd.f32 %v302_v24, %v234_v25 }
 0x13c   :  { %v261_v28 = vadd.f32 %v260_v26, %v235_v27 }
 0x13e   :  { %269 = vst [vmem:[#allocation10] sm:$0xff] %v261_v28 }
 0x141   :  { %v237_v29 = vpop.f32.mrf.mxu2 }
 0x142   :  { %v263_v30 = vpop.f32.mrf.mxu3  ;;  %v238_v31 = vadd.f32 %v302_v24, %v237_v29 }
 0x144   :  { %v264_v32 = vadd.f32 %v263_v30, %v238_v31 }
 0x146   :  { %270 = vst [vmem:[#allocation10 + $0x8] sm:$0xff] %v264_v32 }
 0x149   :  { %v240_v33 = vpop.f32.mrf.mxu2 }
 0x14a   :  { %v266_v34 = vpop.f32.mrf.mxu3  ;;  %v241_v35 = vadd.f32 %v302_v24, %v240_v33 }
 0x14c   :  { %v267_v36 = vadd.f32 %v266_v34, %v241_v35 }
 0x14e   :  { %271 = vst [vmem:[#allocation10 + $0x10] sm:$0xff] %v267_v36 }
 0x14f   :  { %284 = dma.vmem_to_hbm [thread:$0]  %s277_s16, 384, %s279_s19, [#allocation4], %s435_s30, %s435_s30, %s436_s6  }
 0x150   :  { %429 = dma.done.wait [#allocation4], 384  }
 0x151   :  { %430 = vsyncadd [#allocation4], 4294966912 }
 0x152   :  { %289 = vsyncpa [#allocation3], 1 }
 0x153   :  { %290 = vsyncpa [#allocation6], 1 }
 0x154   :  { %291 = vsyncpa [#allocation9], 1 }
 0x155   :  { %292 = vsyncpa [#allocation4], 1 }

</bundles_post_ra>
